<compile_context>
chip_gen: v5e
topology: v5e:2x2
jax: 0.10.0
libtpu: 0.0.40
codegen_flags: <defaults>
</compile_context>

<pallas_src>
import jax
import jax.numpy as jnp
from jax import lax
from jax.experimental import pallas as pl
from jax.experimental.pallas import tpu as pltpu

# ----------------------------- configuration --------------------------------
DIM = 32          # MoCo feature dim (PyTorch default 128, shrunk for the demo)
K_QUEUE = 128     # queue length (PyTorch default 65536, shrunk for the demo)
M_MOMENTUM = 0.999
TEMP = 0.07

N_BATCH = 8
CHANNELS = 4
SPATIAL = 16      # H = W = 16

LPOS_LANES = 128  # lane-dense column group that carries the broadcast l_pos


# --------------------------- fused Pallas kernel -----------------------------
def _moco_fused_kernel(ptr_ref, x2_ref, w2_ref, b2_ref, queue_ref,
                       slab_ref, new_queue_ref):
    """Fused encoders, L2-norm, logits and in-place dequeue/enqueue."""
    f32 = jnp.float32
    n = x2_ref.shape[0] // 2     # batch size
    d = w2_ref.shape[1] // 2     # feature dim

    # One MXU pass for both encoders:
    #   [x_q ; x_k] (2N, C*S) @ [w_pool_q | w_pool_k] (C*S, 2D)  (bf16 -> f32)
    z2 = jnp.dot(x2_ref[...], w2_ref[...],
                 preferred_element_type=f32) + b2_ref[...]

    def l2norm(z):
        # F.normalize(dim=1): z * rsqrt(max(||z||^2, eps^2)), eps = 1e-12 (EUP)
        ss = jnp.sum(z * z, axis=1, keepdims=True)
        return z * lax.rsqrt(jnp.maximum(ss, 1e-24))

    q = l2norm(z2[:n, :d])      # query features (N, D), f32
    k = l2norm(z2[n:, d:])      # key features   (N, D), f32

    inv_t = jnp.float32(1.0 / TEMP)
    # l_pos = einsum('nc,nc->n'); l_neg = einsum('nc,kc->nk') against the
    # PRE-update (transposed) queue.  Both scaled by 1/T.
    l_pos = jnp.sum(q * k, axis=1, keepdims=True) * inv_t               # (N, 1)
    l_neg = lax.dot_general(
        q.astype(jnp.bfloat16), queue_ref[...].astype(jnp.bfloat16),
        (((1,), (1,)), ((), ())), preferred_element_type=f32) * inv_t   # (N, K)

    # Lane-dense logits slab: two aligned, unmasked 128-lane stores.
    slab_ref[:, :LPOS_LANES] = jnp.broadcast_to(l_pos, (n, LPOS_LANES))
    slab_ref[:, LPOS_LANES:] = l_neg

    # In-place dequeue/enqueue: queue is aliased input -> output.  Copy the
    # old contents through, then overwrite rows [ptr, ptr+N).  ptr is always a
    # multiple of N (K % N == 0), so this is an aligned sublane-dim store.
    new_queue_ref[...] = queue_ref[...]
    ptr = pl.multiple_of(ptr_ref[0], N_BATCH)
    new_queue_ref[pl.ds(ptr, n), :] = k.astype(new_queue_ref.dtype)


def moco_fused_call(queue_ptr, x2, w2, b2, queue_t):
    n = x2.shape[0] // 2
    kq, d = queue_t.shape

    slab, new_queue_t = pl.pallas_call(
        _moco_fused_kernel,
        out_shape=(
            jax.ShapeDtypeStruct((n, LPOS_LANES + kq), jnp.float32),
            jax.ShapeDtypeStruct((kq, d), queue_t.dtype),
        ),
        in_specs=[
            pl.BlockSpec(memory_space=pltpu.MemorySpace.SMEM),   # queue_ptr
            pl.BlockSpec(memory_space=pltpu.MemorySpace.VMEM),   # [x_q ; x_k]
            pl.BlockSpec(memory_space=pltpu.MemorySpace.VMEM),   # [w_q | w_k]
            pl.BlockSpec(memory_space=pltpu.MemorySpace.VMEM),   # [b_q | b_k]
            pl.BlockSpec(memory_space=pltpu.MemorySpace.VMEM),   # queue (K, D)
        ],
        out_specs=(
            pl.BlockSpec(memory_space=pltpu.MemorySpace.VMEM),   # logits slab
            pl.BlockSpec(memory_space=pltpu.MemorySpace.VMEM),   # new queue
        ),
        input_output_aliases={4: 1},   # queue buffer updated in place
    )(queue_ptr, x2, w2, b2, queue_t)
    return slab, new_queue_t


# ----------------------------- MoCo forward ----------------------------------
def moco_forward(im_q, im_k, params, queue_t, queue_ptr):
    """im_q, im_k: NCHW float32.  queue_t: (K, dim) transposed queue buffer.

    Returns (logits, labels, new_state) with new_state = (params, queue_t, ptr).
    """
    n, c, h, w = im_q.shape
    s = h * w
    w_q, b_q, w_k, b_k = params

    # Momentum update of the key encoder (tiny elementwise -> plain JAX glue).
    w_k_new = w_k * M_MOMENTUM + w_q * (1.0 - M_MOMENTUM)
    b_k_new = b_k * M_MOMENTUM + b_q * (1.0 - M_MOMENTUM)

    # Fold "global avg pool -> Linear(C, D)" into a (C*S, D) matrix and fuse
    # the two encoders into a single matmul (stacked LHS, concatenated RHS).
    inv_s = 1.0 / s
    w_pool_q = jnp.repeat(w_q, s, axis=0) * inv_s
    w_pool_k = jnp.repeat(w_k_new, s, axis=0) * inv_s
    x2 = jnp.concatenate([im_q.reshape(n, c * s), im_k.reshape(n, c * s)],
                         axis=0).astype(jnp.bfloat16)
    w2 = jnp.concatenate([w_pool_q, w_pool_k], axis=1).astype(jnp.bfloat16)
    b2 = jnp.concatenate([b_q, b_k_new], axis=1)

    # Batch shuffle / unshuffle DDP: with a per-sample encoder and
    # world_size == 1 it is an exact mathematical no-op, so it is dropped.
    ptr_smem = jnp.reshape(queue_ptr, (1,)).astype(jnp.int32)
    slab, new_queue_t = moco_fused_call(ptr_smem, x2, w2, b2, queue_t)

    # logits = cat([l_pos, l_neg], 1) / T  (1/T already applied in-kernel).
    # NOTE: at production K consume the slab directly instead of this concat.
    logits = jnp.concatenate([slab[:, :1], slab[:, LPOS_LANES:]], axis=1)
    labels = jnp.zeros((n,), dtype=jnp.int32)   # torch.long -> int32 on TPU

    new_ptr = (queue_ptr + n) % K_QUEUE
    new_state = ((w_q, b_q, w_k_new, b_k_new), new_queue_t, new_ptr)
    return logits, labels, new_state


# --------------------------------- main --------------------------------------
if __name__ == "__main__":
    assert K_QUEUE % N_BATCH == 0

    root = jax.random.PRNGKey(0)
    k_img_q, k_img_k, k_w, k_queue = jax.random.split(root, 4)

    # Deterministic synthetic "base encoder" parameters: Linear(C, DIM).
    w_q = jax.random.normal(k_w, (CHANNELS, DIM), jnp.float32) * 0.1
    b_q = jnp.zeros((1, DIM), jnp.float32)
    # encoder_k is initialized as a copy of encoder_q (per __init__).
    w_k = w_q
    b_k = b_q
    params = (w_q, b_q, w_k, b_k)

    # Queue buffer, stored transposed (K, dim): randn normalized along the
    # feature axis (== PyTorch's randn(dim, K) normalized along dim=0).
    queue_t = jax.random.normal(k_queue, (K_QUEUE, DIM), jnp.float32)
    queue_t = queue_t * lax.rsqrt(
        jnp.maximum(jnp.sum(queue_t * queue_t, axis=1, keepdims=True), 1e-24))
    queue_ptr = jnp.int32(0)

    # Inputs (NCHW like PyTorch).
    im_q = jax.random.normal(k_img_q, (N_BATCH, CHANNELS, SPATIAL, SPATIAL),
                             jnp.float32)
    im_k = jax.random.normal(k_img_k, (N_BATCH, CHANNELS, SPATIAL, SPATIAL),
                             jnp.float32)

    # Donate the queue so the in-kernel aliased enqueue happens truly in place.
    fwd = jax.jit(moco_forward, donate_argnums=(3,))
    logits, labels, new_state = fwd(im_q, im_k, params, queue_t, queue_ptr)
    jax.block_until_ready((logits, labels, new_state))

    assert logits.shape == (N_BATCH, 1 + K_QUEUE)
    assert labels.shape == (N_BATCH,)
    assert new_state[1].shape == (K_QUEUE, DIM)
    print("KERNEL_OK")
</pallas_src>

<mosaic_0001>
module attributes {stable_mosaic.version = 11 : i64} {
  func.func @_moco_fused_kernel(%arg0: memref<1xi32, #tpu.memory_space<smem>>, %arg1: memref<16x1024xbf16, #tpu.memory_space<vmem>>, %arg2: memref<1024x64xbf16, #tpu.memory_space<vmem>>, %arg3: memref<1x64xf32, #tpu.memory_space<vmem>>, %arg4: memref<128x32xf32, #tpu.memory_space<vmem>>, %arg5: memref<8x256xf32, #tpu.memory_space<vmem>>, %arg6: memref<128x32xf32, #tpu.memory_space<vmem>>) attributes {dimension_semantics = [], scalar_prefetch = 0 : i64, scratch_operands = 0 : i64, tpu.core_type = #tpu.core_type<tc>} {
    %c0 = arith.constant 0 : index
    %c0_0 = arith.constant 0 : index
    %0 = vector.load %arg1[%c0, %c0_0] : memref<16x1024xbf16, #tpu.memory_space<vmem>>, vector<16x1024xbf16>
    %c0_1 = arith.constant 0 : index
    %c0_2 = arith.constant 0 : index
    %1 = vector.load %arg2[%c0_1, %c0_2] : memref<1024x64xbf16, #tpu.memory_space<vmem>>, vector<1024x64xbf16>
    %cst = arith.constant dense<0.000000e+00> : vector<16x64xf32>
    %2 = tpu.matmul %0, %1, %cst {dimension_numbers = #tpu.dot_dimension_numbers<[1], [0], [0], [1], [0, 0, 1, 1], [], []>} : vector<16x1024xbf16>, vector<1024x64xbf16>, vector<16x64xf32> -> vector<16x64xf32>
    %c0_3 = arith.constant 0 : index
    %c0_4 = arith.constant 0 : index
    %3 = vector.load %arg3[%c0_3, %c0_4] : memref<1x64xf32, #tpu.memory_space<vmem>>, vector<1x64xf32>
    %4 = vector.broadcast %3 : vector<1x64xf32> to vector<16x64xf32>
    %5 = arith.addf %2, %4 : vector<16x64xf32>
    %6 = vector.extract_strided_slice %5 {offsets = [0, 0], sizes = [8, 32], strides = [1, 1]} : vector<16x64xf32> to vector<8x32xf32>
    %7 = arith.mulf %6, %6 : vector<8x32xf32>
    %cst_5 = arith.constant dense<0.000000e+00> : vector<8xf32>
    %8 = vector.multi_reduction <add>, %7, %cst_5 [1] : vector<8x32xf32> to vector<8xf32>
    %9 = vector.shape_cast %8 : vector<8xf32> to vector<8x1xf32>
    %cst_6 = arith.constant 1.000000e-24 : f32
    %10 = vector.broadcast %cst_6 : f32 to vector<8x1xf32>
    %11 = arith.maximumf %9, %10 : vector<8x1xf32>
    %12 = math.rsqrt %11 : vector<8x1xf32>
    %13 = vector.broadcast %12 : vector<8x1xf32> to vector<8x32xf32>
    %14 = arith.mulf %6, %13 : vector<8x32xf32>
    %15 = vector.extract_strided_slice %5 {offsets = [8, 32], sizes = [8, 32], strides = [1, 1]} : vector<16x64xf32> to vector<8x32xf32>
    %16 = arith.mulf %15, %15 : vector<8x32xf32>
    %cst_7 = arith.constant dense<0.000000e+00> : vector<8xf32>
    %17 = vector.multi_reduction <add>, %16, %cst_7 [1] : vector<8x32xf32> to vector<8xf32>
    %18 = vector.shape_cast %17 : vector<8xf32> to vector<8x1xf32>
    %cst_8 = arith.constant 1.000000e-24 : f32
    %19 = vector.broadcast %cst_8 : f32 to vector<8x1xf32>
    %20 = arith.maximumf %18, %19 : vector<8x1xf32>
    %21 = math.rsqrt %20 : vector<8x1xf32>
    %22 = vector.broadcast %21 : vector<8x1xf32> to vector<8x32xf32>
    %23 = arith.mulf %15, %22 : vector<8x32xf32>
    %24 = arith.mulf %14, %23 : vector<8x32xf32>
    %cst_9 = arith.constant dense<0.000000e+00> : vector<8xf32>
    %25 = vector.multi_reduction <add>, %24, %cst_9 [1] : vector<8x32xf32> to vector<8xf32>
    %26 = vector.shape_cast %25 : vector<8xf32> to vector<8x1xf32>
    %cst_10 = arith.constant 14.2857141 : f32
    %27 = vector.broadcast %cst_10 : f32 to vector<8x1xf32>
    %28 = arith.mulf %26, %27 : vector<8x1xf32>
    %29 = arith.truncf %14 : vector<8x32xf32> to vector<8x32xbf16>
    %c0_11 = arith.constant 0 : index
    %c0_12 = arith.constant 0 : index
    %30 = vector.load %arg4[%c0_11, %c0_12] : memref<128x32xf32, #tpu.memory_space<vmem>>, vector<128x32xf32>
    %31 = arith.truncf %30 : vector<128x32xf32> to vector<128x32xbf16>
    %cst_13 = arith.constant dense<0.000000e+00> : vector<8x128xf32>
    %32 = tpu.matmul %29, %31, %cst_13 {dimension_numbers = #tpu.dot_dimension_numbers<[1], [1], [0], [0], [0, 0, 1, 0], [], []>} : vector<8x32xbf16>, vector<128x32xbf16>, vector<8x128xf32> -> vector<8x128xf32>
    %cst_14 = arith.constant 14.2857141 : f32
    %33 = vector.broadcast %cst_14 : f32 to vector<8x128xf32>
    %34 = arith.mulf %32, %33 : vector<8x128xf32>
    %35 = vector.shape_cast %28 : vector<8x1xf32> to vector<8x1xf32>
    %36 = vector.broadcast %35 : vector<8x1xf32> to vector<8x128xf32>
    %c0_15 = arith.constant 0 : index
    %c0_16 = arith.constant 0 : index
    %37 = vector.load %arg5[%c0_15, %c0_16] : memref<8x256xf32, #tpu.memory_space<vmem>>, vector<8x128xf32>
    tpu.vector_store %arg5[%c0_15, %c0_16], %36 {strides = array<i32>} : memref<8x256xf32, #tpu.memory_space<vmem>>, vector<8x128xf32>,
    %c0_17 = arith.constant 0 : index
    %c128 = arith.constant 128 : index
    %38 = vector.load %arg5[%c0_17, %c128] : memref<8x256xf32, #tpu.memory_space<vmem>>, vector<8x128xf32>
    tpu.vector_store %arg5[%c0_17, %c128], %34 {strides = array<i32>} : memref<8x256xf32, #tpu.memory_space<vmem>>, vector<8x128xf32>,
    %c0_18 = arith.constant 0 : index
    %c0_19 = arith.constant 0 : index
    %39 = vector.load %arg4[%c0_18, %c0_19] : memref<128x32xf32, #tpu.memory_space<vmem>>, vector<128x32xf32>
    %c0_20 = arith.constant 0 : index
    %c0_21 = arith.constant 0 : index
    %40 = vector.load %arg6[%c0_20, %c0_21] : memref<128x32xf32, #tpu.memory_space<vmem>>, vector<128x32xf32>
    tpu.vector_store %arg6[%c0_20, %c0_21], %39 {strides = array<i32>} : memref<128x32xf32, #tpu.memory_space<vmem>>, vector<128x32xf32>,
    %c0_22 = arith.constant 0 : index
    %41 = memref.load %arg0[%c0_22] : memref<1xi32, #tpu.memory_space<smem>>
    %42 = tpu.assume_multiple %41, 8 : i32
    %43 = arith.index_cast %42 : i32 to index
    %c0_23 = arith.constant 0 : index
    %44 = vector.load %arg6[%43, %c0_23] : memref<128x32xf32, #tpu.memory_space<vmem>>, vector<8x32xf32>
    tpu.vector_store %arg6[%43, %c0_23], %23 {strides = array<i32>} : memref<128x32xf32, #tpu.memory_space<vmem>>, vector<8x32xf32>,
    return
  }
}

</mosaic_0001>

<bundles_post_ra>
// kernel: moco_forward.1
= control target key start
LH: loop header
LB: loop body
LE: loop exit
PB: predicated region body
PF: predicated region fallthrough
CT: control target
= control target key end

     0   :  { %vm700_vm0 = vcmask 261120   ;;  %s1224_s25 = smov 96   ;;  %s1652_s2 = inlined_call_operand.vmem [shape: bf16[1024,64], index: 2, kind: input, shape index: {}]   ;;  %s1653_s3 = inlined_call_operand.vmem [shape: f32[1,64], index: 3, kind: input, shape index: {}]   ;;  %s1654_s1 = inlined_call_operand.vmem [shape: bf16[16,1024], index: 1, kind: input, shape index: {}]   ;;  %s1655_s4 = inlined_call_operand.vmem [shape: f32[128,32], index: 4, kind: input, shape index: {}, may-alias: {4,6}]   ;;  %s1656_s6 = inlined_call_operand.vmem [shape: f32[128,32], index: 6, kind: output, shape index: {1}, may-alias: {4,6}]   ;;  %s1657_s5 = inlined_call_operand.vmem [shape: f32[8,256], index: 5, kind: output, shape index: {0}]   ;;  %s1658_s0 = inlined_call_operand.<no memory space> [shape: s32[1], index: 0, kind: input, shape index: {}]  }
   0x1   :  { %v1161_v0 = vld [vmem:[%s1652_s2 + $0x38] sm:$0xff]  ;;  %v1160_v2 = vld [vmem:[%s1652_s2 + $0x30] sm:$0xff]  ;;  %v1159_v6 = vld [vmem:[%s1652_s2 + $0x28] sm:$0xff]  ;;  %s846_s29 = scalar_lea.vmem %s1656_s6, %s1658_s0 }
   0x2   :  { %v1177_v1 = vld [vmem:[%s1652_s2 + $0xb8] sm:$0xff]  ;;  %587 = vmatpush.bf16.msra.mxu1 %v1161_v0  ;;  %v1176_v4 = vld [vmem:[%s1652_s2 + $0xb0] sm:$0xff]  ;;  %v1175_v8 = vld [vmem:[%s1652_s2 + $0xa8] sm:$0xff] }
   0x3   :  { %v1185_v3 = vld [vmem:[%s1652_s2 + $0xf8] sm:$0xff]  ;;  %615 = vmatpush.bf16.msra.mxu2 %v1177_v1  ;;  %v1184_v5 = vld [vmem:[%s1652_s2 + $0xf0] sm:$0xff]  ;;  %v1183_v9 = vld [vmem:[%s1652_s2 + $0xe8] sm:$0xff] }
   0x4   :  { %629 = vmatpush.bf16.msra.mxu3 %v1185_v3  ;;  %v1193_v7 = vld [vmem:[%s1652_s2 + $0x138] sm:$0xff]  ;;  %v1192_v10 = vld [vmem:[%s1652_s2 + $0x130] sm:$0xff]  ;;  %v1158_v11 = vld [vmem:[%s1652_s2 + $0x20] sm:$0xff] }
   0x5   :  { %643 = vmatpush.bf16.msra.mxu0 %v1193_v7  ;;  %v1174_v12 = vld [vmem:[%s1652_s2 + $0xa0] sm:$0xff]  ;;  %v1191_v14 = vld [vmem:[%s1652_s2 + $0x128] sm:$0xff]  ;;  %v1157_v15 = vld [vmem:[%s1652_s2 + $0x18] sm:$0xff] }
   0x6   :  { %588 = vmatpush.bf16.msra.mxu1 %v1160_v2  ;;  %v1182_v13 = vld [vmem:[%s1652_s2 + $0xe0] sm:$0xff]  ;;  %v1173_v16 = vld [vmem:[%s1652_s2 + $0x98] sm:$0xff]  ;;  %v1156_v19 = vld [vmem:[%s1652_s2 + $0x10] sm:$0xff] }
   0x7   :  { %616 = vmatpush.bf16.msra.mxu2 %v1176_v4  ;;  %v1181_v17 = vld [vmem:[%s1652_s2 + $0xd8] sm:$0xff]  ;;  %v1190_v18 = vld [vmem:[%s1652_s2 + $0x120] sm:$0xff]  ;;  %v1172_v20 = vld [vmem:[%s1652_s2 + $0x90] sm:$0xff] }
   0x8   :  { %630 = vmatpush.bf16.msra.mxu3 %v1184_v5  ;;  %v1180_v21 = vld [vmem:[%s1652_s2 + $0xd0] sm:$0xff]  ;;  %v1189_v22 = vld [vmem:[%s1652_s2 + $0x118] sm:$0xff]  ;;  %v1155_v23 = vld [vmem:[%s1652_s2 + $0x8] sm:$0xff] }
   0x9   :  { %644 = vmatpush.bf16.msra.mxu0 %v1192_v10  ;;  %v1171_v24 = vld [vmem:[%s1652_s2 + $0x88] sm:$0xff]  ;;  %v1188_v26 = vld [vmem:[%s1652_s2 + $0x110] sm:$0xff]  ;;  %v1154_v27 = vld [vmem:[%s1652_s2] sm:$0xff] }
   0xa   :  { %589 = vmatpush.bf16.msra.mxu1 %v1159_v6  ;;  %v1179_v25 = vld [vmem:[%s1652_s2 + $0xc8] sm:$0xff]  ;;  %v1169_v28 = vld [vmem:[%s1652_s2 + $0x78] sm:$0xff]  ;;  %v859_v29 = vld [vmem:[%s1654_s1] sm:$0xf] }
   0xb   :  { %617 = vmatpush.bf16.msra.mxu2 %v1175_v8  ;;  %v1150_v30 = vld [vmem:[%s1654_s1 + $0x1c] sm:$0xf0]  ;;  %v1209_v32 = vld [vmem:[%s1652_s2 + $0x1b8] sm:$0xff]  ;;  %v867_v33 = vld [vmem:[%s1654_s1 + $0x8] sm:$0xf] }
   0xc   :  { %631 = vmatpush.bf16.msra.mxu3 %v1183_v9  ;;  %v1170_v31 = vld [vmem:[%s1652_s2 + $0x80] sm:$0xff]  ;;  %v1151_v34 = vld [vmem:[%s1654_s1 + $0x24] sm:$0xf0]  ;;  %v1147_v36 = vld [vmem:[%s1654_s1 + $0xc] sm:$0xf]  ;;  %v860_v38 = vor.u32 %v1150_v30, %v859_v29 }
   0xd   :  { %645 = vmatpush.bf16.msra.mxu0 %v1191_v14  ;;  %v1178_v35 = vld [vmem:[%s1652_s2 + $0xc0] sm:$0xff]  ;;  %v869_v37 = vld [vmem:[%s1654_s1 + $0x28] sm:$0xf0]  ;;  %v1217_v39 = vld [vmem:[%s1652_s2 + $0x1f8] sm:$0xff]  ;;  %v868_v40 = vor.u32 %v1151_v34, %v867_v33 }
   0xe   :  { %590 = vmatpush.bf16.msra.mxu1 %v1158_v11  ;;  %v1187_v41 = vld [vmem:[%s1652_s2 + $0x108] sm:$0xff]  ;;  %v1168_v42 = vld [vmem:[%s1652_s2 + $0x70] sm:$0xff]  ;;  %v872_v43 = vor.u32 %v1147_v36, %v869_v37  ;;  %v1186_v46 = vld [vmem:[%s1652_s2 + $0x100] sm:$0xff] }
   0xf   :  { %618 = vmatpush.bf16.msra.mxu2 %v1174_v12  ;;  %v1208_v44 = vld [vmem:[%s1652_s2 + $0x1b0] sm:$0xff]  ;;  %v1167_v49 = vld [vmem:[%s1652_s2 + $0x68] sm:$0xff]  ;;  %v1166_v53 = vld [vmem:[%s1652_s2 + $0x60] sm:$0xff] }
  0x10   :  { %632 = vmatpush.bf16.msra.mxu3 %v1182_v13  ;;  %v1216_v45 = vld [vmem:[%s1652_s2 + $0x1f0] sm:$0xff]  ;;  %v1207_v50 = vld [vmem:[%s1652_s2 + $0x1a8] sm:$0xff]  ;;  %v1206_v54 = vld [vmem:[%s1652_s2 + $0x1a0] sm:$0xff] }
  0x11   :  { %646 = vmatpush.bf16.msra.mxu0 %v1190_v18  ;;  %v875_v47 = vld [vmem:[%s1654_s1 + $0x10] sm:$0xf]  ;;  %v1215_v51 = vld [vmem:[%s1652_s2 + $0x1e8] sm:$0xff]  ;;  %v1214_v55 = vld [vmem:[%s1652_s2 + $0x1e0] sm:$0xff] }
  0x12   :  { %591 = vmatpush.bf16.msra.mxu1 %v1157_v15  ;;  %v1152_v48 = vld [vmem:[%s1654_s1 + $0x2c] sm:$0xf0]  ;;  %v1165_v56 = vld [vmem:[%s1652_s2 + $0x58] sm:$0xff]  ;;  %v1163_v62 = vld [vmem:[%s1652_s2 + $0x48] sm:$0xff] }
  0x13   :  { %619 = vmatpush.bf16.msra.mxu2 %v1173_v16  ;;  %v876_v52 = vor.u32 %v1152_v48, %v875_v47  ;;  %v1205_v57 = vld [vmem:[%s1652_s2 + $0x198] sm:$0xff]  ;;  %v1164_v59 = vld [vmem:[%s1652_s2 + $0x50] sm:$0xff]  ;;  %v1203_v63 = vld [vmem:[%s1652_s2 + $0x188] sm:$0xff] }
  0x14   :  { %633 = vmatpush.bf16.msra.mxu3 %v1181_v17  ;;  %v1213_v58 = vld [vmem:[%s1652_s2 + $0x1d8] sm:$0xff]  ;;  %v1204_v60 = vld [vmem:[%s1652_s2 + $0x190] sm:$0xff]  ;;  %v1211_v0 = vld [vmem:[%s1652_s2 + $0x1c8] sm:$0xff] }
  0x15   :  { %647 = vmatpush.bf16.msra.mxu0 %v1189_v22  ;;  %v1212_v61 = vld [vmem:[%s1652_s2 + $0x1d0] sm:$0xff]  ;;  %v1162_v1 = vld [vmem:[%s1652_s2 + $0x40] sm:$0xff]  ;;  %v1201_v2 = vld [vmem:[%s1652_s2 + $0x178] sm:$0xff] }
  0x16   :  { %592 = vmatpush.bf16.msra.mxu1 %v1156_v19  ;;  %v1146_v3 = vld [vmem:[%s1654_s1 + $0x4] sm:$0xf]  ;;  %v883_v6 = vld [vmem:[%s1654_s1 + $0x18] sm:$0xf]  ;;  %v1149_v9 = vld [vmem:[%s1654_s1 + $0x1c] sm:$0xf] }
  0x17   :  { %620 = vmatpush.bf16.msra.mxu2 %v1172_v20  ;;  %v861_v4 = vld [vmem:[%s1654_s1 + $0x20] sm:$0xf0]  ;;  %v1153_v7 = vld [vmem:[%s1654_s1 + $0x34] sm:$0xf0]  ;;  %v885_v10 = vld [vmem:[%s1654_s1 + $0x38] sm:$0xf0] }
  0x18   :  { %634 = vmatpush.bf16.msra.mxu3 %v1180_v21  ;;  %v1202_v5 = vld [vmem:[%s1652_s2 + $0x180] sm:$0xff]  ;;  %v864_v11 = vor.u32 %v1146_v3, %v861_v4  ;;  %v884_v12 = vor.u32 %v1153_v7, %v883_v6  ;;  %v1200_v13 = vld [vmem:[%s1652_s2 + $0x170] sm:$0xff]  ;;  %v888_v14 = vor.u32 %v1149_v9, %v885_v10  ;;  %v1199_v15 = vld [vmem:[%s1652_s2 + $0x168] sm:$0xff] }
  0x19   :  { %648 = vmatpush.bf16.msra.mxu0 %v1188_v26  ;;  %v1210_v8 = vld [vmem:[%s1652_s2 + $0x1c0] sm:$0xff]  ;;  %v1197_v17 = vld [vmem:[%s1652_s2 + $0x158] sm:$0xff]  ;;  %v1196_v18 = vld [vmem:[%s1652_s2 + $0x150] sm:$0xff] }
  0x1a   :  { %593 = vmatpush.bf16.msra.mxu1 %v1155_v23  ;;  %v1198_v16 = vld [vmem:[%s1652_s2 + $0x160] sm:$0xff]  ;;  %v1195_v19 = vld [vmem:[%s1652_s2 + $0x148] sm:$0xff]  ;;  %v1148_v21 = vld [vmem:[%s1654_s1 + $0x14] sm:$0xf] }
  0x1b   :  { %621 = vmatpush.bf16.msra.mxu2 %v1171_v24  ;;  %v1194_v20 = vld [vmem:[%s1652_s2 + $0x140] sm:$0xff]  ;;  %v877_v22 = vld [vmem:[%s1654_s1 + $0x30] sm:$0xf0] }
  0x1c   :  { %635 = vmatpush.bf16.msra.mxu3 %v1179_v25  ;;  %v880_v23 = vor.u32 %v1148_v21, %v877_v22  ;;  %v1219_v26 = vld [vmem:[%s1653_s3] ss:$0 sm:$0xff] }
  0x1d   :  { %649 = vmatpush.bf16.msra.mxu0 %v1187_v41 }
  0x1e   :  { %594 = vmatpush.bf16.msra.mxu1 %v1154_v27 }
  0x1f   :  { %622 = vmatpush.bf16.msra.mxu2 %v1170_v31 }
  0x20   :  { %636 = vmatpush.bf16.msra.mxu3 %v1178_v35 }
  0x21   :  { %595 = vmatmul.bf16.vlgmr.msra.gmra.mxu1 %v860_v38  ;;  %650 = vmatpush.bf16.msra.mxu0 %v1186_v46  ;;  %v760_v38 = vld [vmem:[%s1655_s4 + $0x70] sm:$0xff] }
  0x22   :  { %601 = vmatpush.bf16.msrb.mxu1 %v1169_v28  ;;  %623 = vmatmul.bf16.vlgmr.msra.gmra.mxu2 %v868_v40 }
  0x23   :  { %671 = vmatpush.bf16.msrb.mxu2 %v1209_v32  ;;  %637 = vmatmul.bf16.vlgmr.msra.gmra.mxu3 %v872_v43 }
  0x24   :  { %685 = vmatpush.bf16.msrb.mxu3 %v1217_v39  ;;  %651 = vmatmul.bf16.vlgmr.msra.gmra.mxu0 %v876_v52  ;;  %v761_v39 = vld [vmem:[%s1655_s4 + $0x78] sm:$0xff] }
  0x25   :  { %v769_v41 = vpack.c.bf16 %v761_v39, %v760_v38  ;;  %843 = vst.msk [vmem:[%s1656_s6 + $0x70] sm:$0xff] %vm700_vm0, %v760_v38 }
  0x26   :  { %602 = vmatpush.bf16.msrb.mxu1 %v1168_v42  ;;  %844 = vst.msk [vmem:[%s1656_s6 + $0x78] sm:$0xff] %vm700_vm0, %v761_v39 }
  0x27   :  { %672 = vmatpush.bf16.msrb.mxu2 %v1208_v44  ;;  %v795_v47 = vsel %vm700_vm0, %v769_v41, 0 }
  0x28   :  { %686 = vmatpush.bf16.msrb.mxu3 %v1216_v45  ;;  %797 = vmatpush.bf16.xpose.msrb.mxu0 %v795_v47 }
  0x2a   :  { %603 = vmatpush.bf16.msrb.mxu1 %v1167_v49 }
  0x2b   :  { %673 = vmatpush.bf16.msrb.mxu2 %v1207_v50 }
  0x2c   :  { %687 = vmatpush.bf16.msrb.mxu3 %v1215_v51 }
  0x2d   :  { %v758_v44 = vld [vmem:[%s1655_s4 + $0x60] sm:$0xff]  ;;  %v759_v45 = vld [vmem:[%s1655_s4 + $0x68] sm:$0xff] }
  0x2e   :  { %604 = vmatpush.bf16.msrb.mxu1 %v1166_v53  ;;  %841 = vst.msk [vmem:[%s1656_s6 + $0x60] sm:$0xff] %vm700_vm0, %v758_v44  ;;  %v768_v52 = vpack.c.bf16 %v759_v45, %v758_v44 }
  0x2f   :  { %674 = vmatpush.bf16.msrb.mxu2 %v1206_v54  ;;  %842 = vst.msk [vmem:[%s1656_s6 + $0x68] sm:$0xff] %vm700_vm0, %v759_v45 }
  0x30   :  { %688 = vmatpush.bf16.msrb.mxu3 %v1214_v55 }
  0x32   :  { %605 = vmatpush.bf16.msrb.mxu1 %v1165_v56 }
  0x33   :  { %675 = vmatpush.bf16.msrb.mxu2 %v1205_v57 }
  0x34   :  { %689 = vmatpush.bf16.msrb.mxu3 %v1213_v58 }
  0x36   :  { %606 = vmatpush.bf16.msrb.mxu1 %v1164_v59  ;;  %v756_v50 = vld [vmem:[%s1655_s4 + $0x50] sm:$0xff]  ;;  %v757_v53 = vld [vmem:[%s1655_s4 + $0x58] sm:$0xff] }
  0x37   :  { %676 = vmatpush.bf16.msrb.mxu2 %v1204_v60  ;;  %839 = vst.msk [vmem:[%s1656_s6 + $0x50] sm:$0xff] %vm700_vm0, %v756_v50 }
  0x38   :  { %690 = vmatpush.bf16.msrb.mxu3 %v1212_v61  ;;  %840 = vst.msk [vmem:[%s1656_s6 + $0x58] sm:$0xff] %vm700_vm0, %v757_v53  ;;  %v792_v61 = vsel %vm700_vm0, %v768_v52, 0 }
  0x39   :  { %798 = vmatpush.bf16.xpose.msrb.mxu0 %v792_v61 }
  0x3a   :  { %607 = vmatpush.bf16.msrb.mxu1 %v1163_v62 }
  0x3b   :  { %677 = vmatpush.bf16.msrb.mxu2 %v1203_v63 }
  0x3c   :  { %691 = vmatpush.bf16.msrb.mxu3 %v1211_v0 }
  0x3e   :  { %608 = vmatpush.bf16.msrb.mxu1 %v1162_v1 }
  0x3f   :  { %678 = vmatpush.bf16.msrb.mxu2 %v1202_v5  ;;  %v754_v55 = vld [vmem:[%s1655_s4 + $0x40] sm:$0xff]  ;;  %v755_v57 = vld [vmem:[%s1655_s4 + $0x48] sm:$0xff] }
  0x40   :  { %692 = vmatpush.bf16.msrb.mxu3 %v1210_v8  ;;  %837 = vst.msk [vmem:[%s1656_s6 + $0x40] sm:$0xff] %vm700_vm0, %v754_v55  ;;  %v766_v8 = vpack.c.bf16 %v755_v57, %v754_v55 }
  0x41   :  { %609 = vmatmul.bf16.vlgmr.msrb.gmra.mxu1 %v864_v11  ;;  %838 = vst.msk [vmem:[%s1656_s6 + $0x48] sm:$0xff] %vm700_vm0, %v755_v57 }
  0x42   :  { %657 = vmatpush.bf16.msra.mxu1 %v1201_v2  ;;  %679 = vmatmul.bf16.vlgmr.msrb.gmra.mxu2 %v884_v12  ;;  %v767_v2 = vpack.c.bf16 %v757_v53, %v756_v50  ;;  %v786_v11 = vsel %vm700_vm0, %v766_v8, 0 }
  0x43   :  { %693 = vmatmul.bf16.vlgmr.msrb.gmra.mxu3 %v888_v14 }
  0x44   :  { %v789_v5 = vsel %vm700_vm0, %v767_v2, 0 }
  0x45   :  { %799 = vmatpush.bf16.xpose.msrb.mxu0 %v789_v5 }
  0x46   :  { %658 = vmatpush.bf16.msra.mxu1 %v1200_v13 }
  0x48   :  { %v752_v59 = vld [vmem:[%s1655_s4 + $0x30] sm:$0xff]  ;;  %v753_v62 = vld [vmem:[%s1655_s4 + $0x38] sm:$0xff] }
  0x49   :  { %835 = vst.msk [vmem:[%s1656_s6 + $0x30] sm:$0xff] %vm700_vm0, %v752_v59  ;;  %v765_v13 = vpack.c.bf16 %v753_v62, %v752_v59 }
  0x4a   :  { %659 = vmatpush.bf16.msra.mxu1 %v1199_v15  ;;  %836 = vst.msk [vmem:[%s1656_s6 + $0x38] sm:$0xff] %vm700_vm0, %v753_v62 }
  0x4b   :  { %v783_v15 = vsel %vm700_vm0, %v765_v13, 0 }
  0x4d   :  { %800 = vmatpush.bf16.xpose.msrb.mxu0 %v786_v11 }
  0x4e   :  { %660 = vmatpush.bf16.msra.mxu1 %v1198_v16 }
  0x51   :  { %v750_v16 = vld [vmem:[%s1655_s4 + $0x20] sm:$0xff] }
  0x52   :  { %661 = vmatpush.bf16.msra.mxu1 %v1197_v17  ;;  %v751_v17 = vld [vmem:[%s1655_s4 + $0x28] sm:$0xff] }
  0x53   :  { %833 = vst.msk [vmem:[%s1656_s6 + $0x20] sm:$0xff] %vm700_vm0, %v750_v16 }
  0x54   :  { %834 = vst.msk [vmem:[%s1656_s6 + $0x28] sm:$0xff] %vm700_vm0, %v751_v17 }
  0x55   :  { %801 = vmatpush.bf16.xpose.msrb.mxu0 %v783_v15 }
  0x56   :  { %662 = vmatpush.bf16.msra.mxu1 %v1196_v18  ;;  %v764_v18 = vpack.c.bf16 %v751_v17, %v750_v16 }
  0x5a   :  { %663 = vmatpush.bf16.msra.mxu1 %v1195_v19  ;;  %v780_v19 = vsel %vm700_vm0, %v764_v18, 0 }
  0x5b   :  { %v749_v21 = vld [vmem:[%s1655_s4 + $0x18] sm:$0xff] }
  0x5d   :  { %802 = vmatpush.bf16.xpose.msrb.mxu0 %v780_v19 }
  0x5e   :  { %664 = vmatpush.bf16.msra.mxu1 %v1194_v20  ;;  %v748_v20 = vld [vmem:[%s1655_s4 + $0x10] sm:$0xff] }
  0x5f   :  { %v763_v22 = vpack.c.bf16 %v749_v21, %v748_v20  ;;  %831 = vst.msk [vmem:[%s1656_s6 + $0x10] sm:$0xff] %vm700_vm0, %v748_v20 }
  0x60   :  { %832 = vst.msk [vmem:[%s1656_s6 + $0x18] sm:$0xff] %vm700_vm0, %v749_v21 }
  0x61   :  { %665 = vmatmul.bf16.vlgmr.msra.gmra.mxu1 %v880_v23  ;;  %v777_v23 = vsel %vm700_vm0, %v763_v22, 0 }
  0x65   :  { %803 = vmatpush.bf16.xpose.msrb.mxu0 %v777_v23 }
  0x9e   :  { %v596_v24 = vpop.f32.mrf.mxu1 }
  0x9f   :  { %v597_v28 = vadd.f32 %v1219_v26, %v596_v24  ;;  %v746_v24 = vld [vmem:[%s1655_s4] sm:$0xff] }
  0xa1   :  { %v652_v36 = vpop.f32.mrf.mxu0 }
  0xa5   :  { %v624_v29 = vpop.f32.mrf.mxu2 }
  0xa6   :  { %v598_v25 = vpop.f32.mrf.mxu1  ;;  %v638_v30 = vpop.f32.mrf.mxu3 }
  0xa7   :  { %v599_v42 = vadd.f32 %v1219_v26, %v598_v25  ;;  %v747_v25 = vld [vmem:[%s1655_s4 + $0x8] sm:$0xff] }
  0xa8   :  { %v762_v26 = vpack.c.bf16 %v747_v25, %v746_v24  ;;  %829 = vst.msk [vmem:[%s1656_s6] sm:$0xff] %vm700_vm0, %v746_v24 }
  0xa9   :  { %v654_v1 = vpop.f32.mrf.mxu0  ;;  %830 = vst.msk [vmem:[%s1656_s6 + $0x8] sm:$0xff] %vm700_vm0, %v747_v25 }
  0xad   :  { %v626_v34 = vpop.f32.mrf.mxu2 }
  0xae   :  { %v640_v37 = vpop.f32.mrf.mxu3 }
  0xbe   :  { %v610_v27 = vpop.f32.mrf.mxu1 }
  0xbf   :  { %v611_v31 = vadd.f32 %v610_v27, %v597_v28  ;;  %v774_v27 = vsel %vm700_vm0, %v762_v26, 0 }
  0xc0   :  { %804 = vmatpush.bf16.xpose.msrb.mxu0 %v774_v27 }
  0xc1   :  { %v625_v32 = vadd.f32 %v624_v29, %v611_v31 }
  0xc3   :  { %v639_v35 = vadd.f32 %v638_v30, %v625_v32 }
  0xc5   :  { %v653_v40 = vadd.f32 %v652_v36, %v639_v35  ;;  %v680_v49 = vpop.f32.mrf.mxu2 }
  0xc6   :  { %v612_v33 = vpop.f32.mrf.mxu1  ;;  %v694_v54 = vpop.f32.mrf.mxu3 }
  0xc7   :  { %v613_v48 = vadd.f32 %v612_v33, %v599_v42 }
  0xc9   :  { %v627_v58 = vadd.f32 %v626_v34, %v613_v48 }
  0xcb   :  { %v641_v0 = vadd.f32 %v640_v37, %v627_v58 }
  0xcd   :  { %v655_v4 = vadd.f32 %v654_v1, %v641_v0  ;;  %v682_v7 = vpop.f32.mrf.mxu2 }
  0xce   :  { %v696_v10 = vpop.f32.mrf.mxu3 }
  0xde   :  { %v666_v43 = vpop.f32.mrf.mxu1 }
  0xdf   :  { %v667_v46 = vadd.f32 %v666_v43, %v653_v40 }
  0xe1   :  { %v681_v51 = vadd.f32 %v680_v49, %v667_v46 }
  0xe3   :  { %v1549_v56 = vadd.f32 %v694_v54, %v681_v51 }
  0xe5   :  { %v699_v60 = vmul.f32 %v1549_v56, %v1549_v56 }
  0xe6   :  { %v668_v3 = vpop.f32.mrf.mxu1 }
  0xe7   :  { %v701_v63 = vsel %vm700_vm0, %v699_v60, 0.0  ;;  %v669_v6 = vadd.f32 %v668_v3, %v655_v4 }
  0xe8   :  { %702 = vadd.xlane.f32.xlu0 %v701_v63 }
  0xe9   :  { %v683_v9 = vadd.f32 %v682_v7, %v669_v6 }
  0xeb   :  { %v1582_v12 = vadd.f32 %v696_v10, %v683_v9 }
  0xed   :  { %v716_v14 = vmul.f32 %v1582_v12, %v1582_v12 }
  0xfc   :  { %718 = vrot.lane.b32.xlu0 %v716_v14, %s1224_s25 }
 0x15b   :  { %v703_v28 = vpop.xlane.xlu0 %702 }
 0x15c   :  { %v704_v29 = vmax.f32 %v703_v28, 1e-24 }
 0x15e   :  { %1220 = vrsqrt.f32 %v704_v29  ;;  %vm711_vm2 = vweird.f32 %v704_v29 }
 0x164   :  { %v1221_v30 = vpop.eup %1220 }
 0x165   :  { %v706_v31 = vmul.f32 %v1221_v30, %v704_v29  ;;  %vm712_vm1 = vweird.f32 %v1221_v30 }
 0x166   :  { %vm713_vm3 = vmor %vm711_vm2, %vm712_vm1 }
 0x167   :  { %v707_v32 = vmul.f32 %v1221_v30, %v706_v31 }
 0x169   :  { %v708_v33 = vmul.f32 0.5, %v707_v32 }
 0x16b   :  { %v709_v34 = vsub.f32 1.5, %v708_v33 }
 0x16d   :  { %v710_v35 = vmul.f32 %v1221_v30, %v709_v34 }
 0x16e   :  { %v719_v36 = vpop.permute.xlu0 %718 }
 0x16f   :  { %v714_v37 = vsel %vm713_vm3, %v1221_v30, %v710_v35  ;;  %v721_v38 = vsel %vm700_vm0, %v719_v36, 0.0 }
 0x170   :  { %v715_v39 = vmul.f32 %v714_v37, %v1549_v56  ;;  %722 = vadd.xlane.f32.xlu1 %v721_v38 }
 0x172   :  { %v745_v40 = vpack.c.bf16 %v715_v39, %v715_v39 }
 0x174   :  { %1145 = vmatmul.msk.bf16.vlgmr.msrb.gmra.mxu0 %vm700_vm0, %v745_v40 }
 0x1e3   :  { %v723_v41 = vpop.xlane.xlu1 %722 }
 0x1e4   :  { %v724_v42 = vmax.f32 %v723_v41, 1e-24 }
 0x1e6   :  { %1222 = vrsqrt.f32 %v724_v42  ;;  %vm731_vm5 = vweird.f32 %v724_v42 }
 0x1ec   :  { %v1223_v43 = vpop.eup %1222 }
 0x1ed   :  { %v726_v44 = vmul.f32 %v1223_v43, %v724_v42  ;;  %vm732_vm4 = vweird.f32 %v1223_v43 }
 0x1ee   :  { %vm733_vm6 = vmor %vm731_vm5, %vm732_vm4 }
 0x1ef   :  { %v727_v45 = vmul.f32 %v1223_v43, %v726_v44 }
 0x1f1   :  { %v728_v46 = vmul.f32 0.5, %v727_v45  ;;  %v806_v47 = vpop.f32.mrf.mxu0 }
 0x1f2   :  { %v810_v48 = vmul.f32 14.285714, %v806_v47 }
 0x1f3   :  { %v729_v49 = vsub.f32 1.5, %v728_v46 }
 0x1f4   :  { %812 = vst [vmem:[%s1657_s5 + $0x8] sm:$0xff] %v810_v48 }
 0x1f5   :  { %v730_v50 = vmul.f32 %v1223_v43, %v729_v49 }
 0x1f7   :  { %v734_v51 = vsel %vm733_vm6, %v1223_v43, %v730_v50 }
 0x1f8   :  { %v735_v52 = vmul.f32 %v734_v51, %v1582_v12 }
 0x1f9   :  { %v808_v53 = vpop.f32.mrf.mxu0 }
 0x1fa   :  { %737 = vrot.lane.b32.xlu1 %v735_v52, %s1224_s25 }
 0x26c   :  { %v738_v54 = vpop.permute.xlu1 %737 }
 0x26d   :  { %v740_v55 = vmul.f32 %v738_v54, %v715_v39  ;;  %847 = vst.msk [vmem:[%s846_s29] sm:$0xff] %vm700_vm0, %v738_v54 }
 0x26f   :  { %v741_v56 = vsel %vm700_vm0, %v740_v55, 0.0 }
 0x270   :  { %742 = vadd.xlane.f32.xlu2 %v741_v56 }
 0x2e3   :  { %v743_v57 = vpop.xlane.xlu2 %742 }
 0x2e4   :  { %v744_v58 = vmul.f32 14.285714, %v743_v57 }
 0x2e6   :  { %811 = vst [vmem:[%s1657_s5] sm:$0xff] %v744_v58 }

</bundles_post_ra>
